<compile_context>
chip_gen: v6e
topology: v6e:2x2x1
jax: 0.10.0
libtpu: 0.0.40
codegen_flags: <defaults>
</compile_context>

<pallas_src>
from functools import partial

import jax
import jax.numpy as jnp
from jax.experimental import pallas as pl
from jax.experimental.pallas import tpu as pltpu


def _cdiv(a: int, b: int) -> int:
    return (a + b - 1) // b


def _round_up(x: int, m: int) -> int:
    return _cdiv(x, m) * m


def _gamma_ar_kernel(t_ref, delta_ref, gamma_ref, dgamma_ref, *,
                     half_inv_tau, gamma_mid, half_range, dgamma_c):
    """One (tb, ts) tile of the broadcast (B, S) result.

    t_ref:      (tb, 1)  time values for this row-block (f32)
    delta_ref:  (1, ts)  delta values for this column-block (f32)
    gamma_ref / dgamma_ref: (tb, ts) output tiles

    sigma = sigmoid((t - delta)/tau) = 0.5 * (1 + tanh(0.5*(t - delta)/tau))
    gamma  = gamma_min + range*sigma          = gamma_mid + half_range * h
    dgamma = range/tau * sigma*(1-sigma)      = c - c*h*h
    """
    t = t_ref[...]                      # (tb, 1)
    delta = delta_ref[...]              # (1, ts)

    x = (t - delta) * half_inv_tau      # (tb, ts), broadcast
    h = jnp.tanh(x)                     # single EUP op per element

    gamma = gamma_mid + half_range * h
    dgamma = dgamma_c - dgamma_c * (h * h)

    gamma_ref[...] = gamma.astype(gamma_ref.dtype)
    dgamma_ref[...] = dgamma.astype(dgamma_ref.dtype)


def make_gamma_ar(seq_len: int,
                  gamma_min: float = -10.0,
                  gamma_max: float = 10.0,
                  out_dtype=jnp.float32,
                  max_tb: int = 512,
                  max_ts: int = 4096):
    """Returns (forward, tau); forward(t) -> (gamma, dgamma_dt), each (-1, seq_len, 1)."""
    tau = 1.0 / (seq_len * 5)
    inv_tau = float(seq_len * 5)
    gamma_range = float(gamma_max - gamma_min)

    # delta = flip(linspace(1/S, 1 - 1/S, S)) -- exact match to the PyTorch
    # buffer (also correct for seq_len == 1, where linspace returns [1/S]).
    delta_row = jnp.linspace(1.0 / seq_len, 1.0 - 1.0 / seq_len, seq_len,
                             dtype=jnp.float32)[::-1].reshape(1, seq_len)

    kernel = partial(_gamma_ar_kernel,
                     half_inv_tau=0.5 * inv_tau,
                     gamma_mid=float(gamma_min) + 0.5 * gamma_range,
                     half_range=0.5 * gamma_range,
                     dgamma_c=0.25 * gamma_range * inv_tau)

    def forward(t):
        # Match PyTorch: t.view(-1, 1)
        t2 = jnp.reshape(t, (-1, 1)).astype(jnp.float32)
        B = t2.shape[0]

        # Lane-dense tiles; Pallas masks ragged edge blocks, so outputs keep
        # their exact (B, seq_len) shape (no padding, no post-kernel slice).
        tb = min(max_tb, _round_up(B, 8))
        ts = min(max_ts, _round_up(seq_len, 128))

        # Ensure >= 2 grid blocks along a parallel axis when the problem is
        # large enough, so both v7x TensorCores are engaged.
        if _cdiv(B, tb) == 1 and _cdiv(seq_len, ts) == 1:
            if ts >= 256:
                ts = _round_up(_cdiv(seq_len, 2), 128)
            elif tb >= 16:
                tb = _round_up(_cdiv(B, 2), 8)

        grid = (_cdiv(B, tb), _cdiv(seq_len, ts))

        gamma, dgamma = pl.pallas_call(
            kernel,
            out_shape=(
                jax.ShapeDtypeStruct((B, seq_len), out_dtype),
                jax.ShapeDtypeStruct((B, seq_len), out_dtype),
            ),
            grid=grid,
            in_specs=[
                pl.BlockSpec((tb, 1), lambda i, j: (i, 0)),
                pl.BlockSpec((1, ts), lambda i, j: (0, j)),
            ],
            out_specs=(
                pl.BlockSpec((tb, ts), lambda i, j: (i, j)),
                pl.BlockSpec((tb, ts), lambda i, j: (i, j)),
            ),
            compiler_params=pltpu.CompilerParams(
                dimension_semantics=("parallel", "parallel"),
                vmem_limit_bytes=48 * 1024 * 1024,
            ),
        )(t2, delta_row)

        # Metadata-only reshape; matches PyTorch view(-1, seq_len, 1).
        gamma = gamma.reshape(B, seq_len, 1)
        dgamma = dgamma.reshape(B, seq_len, 1)
        return gamma, dgamma

    return forward, tau


def _reference(t, seq_len, tau, gamma_min, gamma_max):
    """Pure-JAX reference matching the PyTorch module exactly."""
    gamma_range = gamma_max - gamma_min
    delta_vals = jnp.linspace(1.0 / seq_len, 1.0 - 1.0 / seq_len, seq_len,
                              dtype=jnp.float32)
    delta = delta_vals[::-1].reshape(1, seq_len)
    t2 = jnp.reshape(t, (-1, 1)).astype(jnp.float32)
    t_shifted = (t2 - delta) / tau
    sigma = jax.nn.sigmoid(t_shifted)
    gamma = gamma_min + gamma_range * sigma
    dgamma = gamma_range / tau * sigma * (1.0 - sigma)
    return gamma.reshape(-1, seq_len, 1), dgamma.reshape(-1, seq_len, 1)


def _check(t, seq_len, gamma_min=-10.0, gamma_max=10.0):
    forward, tau = make_gamma_ar(seq_len, gamma_min, gamma_max)
    gamma, dgamma = forward(t)
    jax.block_until_ready((gamma, dgamma))

    g_ref, dg_ref = _reference(t, seq_len, tau, gamma_min, gamma_max)
    B = int(jnp.reshape(t, (-1,)).shape[0])
    assert gamma.shape == (B, seq_len, 1), gamma.shape
    assert dgamma.shape == (B, seq_len, 1), dgamma.shape
    # gamma in [-10, 10]; dgamma up to gamma_range/(4*tau) = 25*seq_len.
    # Tolerances absorb tanh-vs-sigmoid lowering and *inv_tau vs /tau ulps.
    assert jnp.allclose(gamma, g_ref, atol=1e-4, rtol=1e-5), \
        float(jnp.max(jnp.abs(gamma - g_ref)))
    assert jnp.allclose(dgamma, dg_ref, atol=5e-3, rtol=1e-4), \
        float(jnp.max(jnp.abs(dgamma - dg_ref)))


if __name__ == "__main__":
    key = jax.random.PRNGKey(0)
    k1, k2 = jax.random.split(key)

    # Small shapes consistent with the module: batch=6 time scalars, seq_len=8.
    t_small = jax.random.uniform(k1, (6,), dtype=jnp.float32)
    _check(t_small, seq_len=8)

    # Larger case exercising the ragged-edge (masked) multi-block grid path.
    t_big = jax.random.uniform(k2, (300,), dtype=jnp.float32)
    _check(t_big, seq_len=256)

    print("KERNEL_OK")
</pallas_src>

<mosaic_0001>
module attributes {stable_mosaic.version = 11 : i64} {
  func.func @_gamma_ar_kernel(%arg0: i32, %arg1: i32, %arg2: memref<8x1xf32, #tpu.memory_space<vmem>>, %arg3: memref<1x128xf32, #tpu.memory_space<vmem>>, %arg4: memref<8x128xf32, #tpu.memory_space<vmem>>, %arg5: memref<8x128xf32, #tpu.memory_space<vmem>>) attributes {dimension_semantics = [#tpu.dimension_semantics<parallel>, #tpu.dimension_semantics<parallel>], iteration_bounds = array<i64: 1, 1>, scalar_prefetch = 0 : i64, scratch_operands = 0 : i64, tpu.core_type = #tpu.core_type<tc>, window_params = [{transform_indices = @transform_0, window_bounds = array<i64: 8, 1>}, {transform_indices = @transform_1, window_bounds = array<i64: 1, 128>}, {transform_indices = @transform_2, window_bounds = array<i64: 8, 128>}, {transform_indices = @transform_3, window_bounds = array<i64: 8, 128>}]} {
    %c0 = arith.constant 0 : index
    %c0_0 = arith.constant 0 : index
    %0 = vector.load %arg2[%c0, %c0_0] : memref<8x1xf32, #tpu.memory_space<vmem>>, vector<8x1xf32>
    %c0_1 = arith.constant 0 : index
    %c0_2 = arith.constant 0 : index
    %1 = vector.load %arg3[%c0_1, %c0_2] : memref<1x128xf32, #tpu.memory_space<vmem>>, vector<1x128xf32>
    %2 = vector.broadcast %0 : vector<8x1xf32> to vector<8x128xf32>
    %3 = vector.broadcast %1 : vector<1x128xf32> to vector<8x128xf32>
    %4 = arith.subf %2, %3 : vector<8x128xf32>
    %cst = arith.constant 2.000000e+01 : f32
    %5 = vector.broadcast %cst : f32 to vector<8x128xf32>
    %6 = arith.mulf %4, %5 : vector<8x128xf32>
    %7 = math.tanh %6 : vector<8x128xf32>
    %cst_3 = arith.constant 1.000000e+01 : f32
    %8 = vector.broadcast %cst_3 : f32 to vector<8x128xf32>
    %9 = arith.mulf %8, %7 : vector<8x128xf32>
    %cst_4 = arith.constant 0.000000e+00 : f32
    %10 = vector.broadcast %cst_4 : f32 to vector<8x128xf32>
    %11 = arith.addf %10, %9 : vector<8x128xf32>
    %12 = arith.mulf %7, %7 : vector<8x128xf32>
    %cst_5 = arith.constant 2.000000e+02 : f32
    %13 = vector.broadcast %cst_5 : f32 to vector<8x128xf32>
    %14 = arith.mulf %13, %12 : vector<8x128xf32>
    %cst_6 = arith.constant 2.000000e+02 : f32
    %15 = vector.broadcast %cst_6 : f32 to vector<8x128xf32>
    %16 = arith.subf %15, %14 : vector<8x128xf32>
    %c0_7 = arith.constant 0 : index
    %c0_8 = arith.constant 0 : index
    %17 = vector.load %arg4[%c0_7, %c0_8] : memref<8x128xf32, #tpu.memory_space<vmem>>, vector<8x128xf32>
    tpu.vector_store %arg4[%c0_7, %c0_8], %11 {strides = array<i32>} : memref<8x128xf32, #tpu.memory_space<vmem>>, vector<8x128xf32>,
    %c0_9 = arith.constant 0 : index
    %c0_10 = arith.constant 0 : index
    %18 = vector.load %arg5[%c0_9, %c0_10] : memref<8x128xf32, #tpu.memory_space<vmem>>, vector<8x128xf32>
    tpu.vector_store %arg5[%c0_9, %c0_10], %16 {strides = array<i32>} : memref<8x128xf32, #tpu.memory_space<vmem>>, vector<8x128xf32>,
    return
  }
  func.func @transform_0(%arg0: i32, %arg1: i32) -> (i32, i32) {
    %c0_i32 = arith.constant 0 : i32
    %c0_i32_0 = arith.constant 0 : i32
    return %arg0, %c0_i32 : i32, i32
  }
  func.func @transform_1(%arg0: i32, %arg1: i32) -> (i32, i32) {
    %c0_i32 = arith.constant 0 : i32
    %c0_i32_0 = arith.constant 0 : i32
    return %c0_i32, %arg1 : i32, i32
  }
  func.func @transform_2(%arg0: i32, %arg1: i32) -> (i32, i32) {
    %c0_i32 = arith.constant 0 : i32
    return %arg0, %arg1 : i32, i32
  }
  func.func @transform_3(%arg0: i32, %arg1: i32) -> (i32, i32) {
    %c0_i32 = arith.constant 0 : i32
    return %arg0, %arg1 : i32, i32
  }
}

</mosaic_0001>

<bundles_post_ra>
// kernel: tpu_custom_call.1
= control target key start
LH: loop header
LB: loop body
LE: loop exit
PB: predicated region body
PF: predicated region fallthrough
CT: control target
= control target key end

     0   :  { %9 = vsyncpa [#allocation3], 0  ;;  %s152_s0 = inlined_call_operand.vmem [shape: f32[6,1], index: 0, kind: input, shape index: {}]   ;;  %s153_s1 = inlined_call_operand.vmem [shape: f32[1,8], index: 1, kind: input, shape index: {}]   ;;  %s154_s2 = inlined_call_operand.hbm [shape: f32[6,8], index: 2, kind: output, shape index: {0}]   ;;  %s155_s3 = inlined_call_operand.hbm [shape: f32[6,8], index: 3, kind: output, shape index: {1}]  }
   0x1   :  { %v15_v0 = vld [vmem:[%s152_s0] sm:$0xff] }
   0x2   :  { %10 = vsyncpa [#allocation5], 0  ;;  %v117_v1 = vmov 0   ;;  %v66_v2 = vld [vmem:[%s153_s1] ss:$0 sm:$0xff]  ;;  %s118_s16 = smov [#allocation2]  }
   0x3   :  { %70 = vset.pattern.permute.xlu0 %v117_v1  ;;  %s44_s17 = sshll.u32 %s118_s16, 4  ;;  %s119_s18 = smov [#allocation4]   ;;  %s45_s17 = int_to_ptr.vmem [resolvable:$true] %s44_s17 }
   0x4   :  { %19 = vperm.xlu0 %70, %v15_v0   ;;  %s54_s0 = sshll.u32 %s119_s18, 4  ;;  %s73_s19 = scalar_lea.vmem %s45_s17, 128  ;;  %s55_s0 = int_to_ptr.vmem [resolvable:$true] %s54_s0 }
   0x5   :  { %p74_p0 = scmp.ne.s32.totalorder %s45_s17, %s73_s19  ;;  %p78_p1 = scmp.lt.s32.totalorder %s45_s17, %s45_s17 }
   0x6   :  { %p79_p2 = scmp.lt.s32.totalorder %s73_s19, %s73_s19 }
   0x8   :  { %p80_p3 = por %p79_p2, %p78_p1 }
   0xa   :  { %p81_p4 = pnand %p80_p3, %p74_p0 }
  0x7f   :  { %v20_v3 = vpop.permute.xlu0 %19 }
  0x80   :  { %v28_v4 = vsub.f32 %v20_v3, %v66_v2 }
  0x82   :  { %v29_v5 = vmul.f32 20.0, %v28_v4 }
  0x84   :  { %71 = vtanh.f32 %v29_v5 }
  0x91   :  { %v72_v6 = vpop.eup %71 }
  0x92   :  { %v31_v7 = vmul.f32 10.0, %v72_v6  ;;  %v33_v8 = vmul.f32 %v72_v6, %v72_v6 }
  0x94   :  { %36 = vst [vmem:[#allocation2] sm:$0xff] %v31_v7  ;;  %v34_v9 = vmul.f32 200.0, %v33_v8 }
  0x95   :  { %84 = shalt.err (!%p81_p4)
}
  0x96   :  { %47 = dma.vmem_to_hbm [thread:$0]  %s45_s17, 128, %s154_s2, [#allocation3]   ;;  %v35_v10 = vsub.f32 200.0, %v34_v9 }
  0x97   :  { %s93_s21 = scalar_lea.vmem %s55_s0, 128  ;;  %p98_p6 = scmp.lt.s32.totalorder %s55_s0, %s55_s0 }
  0x98   :  { %37 = vst [vmem:[#allocation4] sm:$0xff] %v35_v10  ;;  %p94_p5 = scmp.ne.s32.totalorder %s55_s0, %s93_s21  ;;  %p99_p7 = scmp.lt.s32.totalorder %s93_s21, %s93_s21 }
  0x9a   :  { %p100_p8 = por %p99_p7, %p98_p6 }
  0x9c   :  { %p101_p9 = pnand %p100_p8, %p94_p5 }
  0x9e   :  { %104 = shalt.err (!%p101_p9)
}
  0x9f   :  { %57 = dma.vmem_to_hbm [thread:$0]  %s55_s0, 128, %s155_s3, [#allocation5]  }
  0xa0   :  { %113 = dma.done.wait [#allocation3], 128  }
  0xa1   :  { %114 = vsyncadd [#allocation3], 4294967168 }
  0xa2   :  { %115 = dma.done.wait [#allocation5], 128  }
  0xa3   :  { %116 = vsyncadd [#allocation5], 4294967168 }
  0xa4   :  { %64 = vsyncpa [#allocation3], 1 }
  0xa5   :  { %65 = vsyncpa [#allocation5], 1 }

</bundles_post_ra>
